<compile_context>
chip_gen: v7x
topology: tpu7x:2x2x1
jax: 0.10.0
libtpu: 0.0.40
codegen_flags: <defaults>
</compile_context>

<pallas_src>
import functools

import jax
import jax.numpy as jnp
from jax import lax
from jax.experimental import pallas as pl
from jax.experimental.pallas import tpu as pltpu


def _cross_attn_kernel(xq_ref, xkv_ref,
                       wq_ref, bq_ref,
                       wk_ref, bk_ref,
                       wv_ref, bv_ref,
                       wo_ref, bo_ref,
                       o_ref,
                       k_cache, v_cache, oh_cat,
                       *, num_heads, head_dim, scaling):
    io_dtype = xq_ref.dtype

    # ---- K/V projections: computed once per batch (first q-tile), cached in VMEM ----
    @pl.when(pl.program_id(1) == 0)
    def _():
        xkv = xkv_ref[0]                                             # (Skv, E), native dtype
        k = jnp.dot(xkv, wk_ref[...], preferred_element_type=jnp.float32) \
            + bk_ref[...].astype(jnp.float32)
        v = jnp.dot(xkv, wv_ref[...], preferred_element_type=jnp.float32) \
            + bv_ref[...].astype(jnp.float32)
        k_cache[...] = k.astype(k_cache.dtype)
        v_cache[...] = v.astype(v_cache.dtype)

    # ---- Q projection for this query tile (scaling folded into q once, in f32) ------
    xq = xq_ref[0]                                                   # (tq, E)
    q = jnp.dot(xq, wq_ref[...], preferred_element_type=jnp.float32) \
        + bq_ref[...].astype(jnp.float32)
    q = (q * scaling).astype(io_dtype)

    k = k_cache[...]                                                 # (Skv, E), io dtype
    v = v_cache[...]                                                 # (Skv, E), io dtype

    # bf16 exp takes the bf16 EUP path on v6e/v7x; keep f32 exp for f32 inputs.
    exp_dtype = jnp.bfloat16 if io_dtype == jnp.bfloat16 else jnp.float32

    # Static per-head loop; per-head outputs are lane-concatenated into oh_cat so the
    # output projection is a single full-E-contraction MXU matmul afterwards.
    for h in range(num_heads):
        lo = h * head_dim
        qh = q[:, lo:lo + head_dim]                                  # (tq, Dh)
        kh = k[:, lo:lo + head_dim]                                  # (Skv, Dh)
        vh = v[:, lo:lo + head_dim]                                  # (Skv, Dh)

        # scores = qh @ kh^T (scaling already folded into q); f32 accumulation.
        s = lax.dot_general(qh, kh, (((1,), (1,)), ((), ())),
                            preferred_element_type=jnp.float32)     # (tq, Skv)

        # softmax over keys, normalization deferred until after the PV matmul.
        s = s - jnp.max(s, axis=-1, keepdims=True)
        p = jnp.exp(s.astype(exp_dtype))                             # (tq, Skv)
        rowsum = jnp.sum(p, axis=-1, keepdims=True, dtype=jnp.float32)

        oh = jnp.dot(p.astype(io_dtype), vh,
                     preferred_element_type=jnp.float32)             # (tq, Dh) f32
        oh = oh * pl.reciprocal(rowsum, approx=True)                 # normalize (tq, Dh)

        oh_cat[:, lo:lo + head_dim] = oh.astype(oh_cat.dtype)

    # ---- single full-width output projection ----------------------------------------
    out = jnp.dot(oh_cat[...], wo_ref[...], preferred_element_type=jnp.float32) \
          + bo_ref[...].astype(jnp.float32)
    o_ref[0] = out.astype(o_ref.dtype)


def _vmem_capacity_bytes():
    try:
        return int(pltpu.get_tpu_info().vmem_capacity_bytes)
    except Exception:
        return 64 << 20  # conservative fallback (v7x-sized)


def _pick_q_tile(sq, max_tile):
    """Full-extent tile for small Sq; otherwise the largest divisor <= max_tile."""
    if sq <= max_tile:
        return sq
    for t in (512, 256, 128, 64, 32, 16, 8):
        if t <= max_tile and sq % t == 0:
            return t
    # TODO(synk): pad awkward Sq instead of falling back to a single huge tile.
    return sq


def cross_attention(xq, xkv, wq, bq, wk, bk, wv, bv, wo, bo, *, num_heads):
    """Fused cross attention: softmax((xq Wq)(xkv Wk)^T / sqrt(dh)) (xkv Wv) Wo + bo."""
    B, Sq, E = xq.shape
    _, Skv, _ = xkv.shape
    head_dim = E // num_heads
    scaling = float(head_dim) ** -0.5
    io_dtype = xq.dtype

    vmem_cap = _vmem_capacity_bytes()
    # 128 MiB VMEM chips (v5e/v6e): bigger q tiles amortize grid-step overhead.
    # 64 MiB chips (v7x): cap at 256 so per-head (tq, Skv) f32 score tiles stay small.
    max_tile = 512 if vmem_cap >= (100 << 20) else 256
    tq = _pick_q_tile(Sq, max_tile)
    nq = Sq // tq

    kernel = functools.partial(
        _cross_attn_kernel,
        num_heads=num_heads, head_dim=head_dim, scaling=scaling)

    w_spec = pl.BlockSpec((E, E), lambda b, i: (0, 0))
    b_spec = pl.BlockSpec((1, E), lambda b, i: (0, 0))

    # Advisory cost estimate so XLA schedules the two directional calls sensibly.
    itemsz = jnp.dtype(io_dtype).itemsize
    w_itemsz = jnp.dtype(wq.dtype).itemsize
    flops = int(2 * B * (2 * Sq + 2 * Skv) * E * E      # q/k/v/out projections
                + 4 * B * Sq * Skv * E)                 # scores + PV over all heads
    transcendentals = int(B * num_heads * Sq * Skv)     # exp
    bytes_accessed = int(B * Sq * E * itemsz + B * Skv * E * itemsz     # xq, xkv
                         + 4 * E * E * w_itemsz + 4 * E * w_itemsz      # weights, biases
                         + B * Sq * E * itemsz)                         # output
    cost = pl.CostEstimate(flops=flops, transcendentals=transcendentals,
                           bytes_accessed=bytes_accessed)

    return pl.pallas_call(
        kernel,
        out_shape=jax.ShapeDtypeStruct((B, Sq, E), io_dtype),
        grid=(B, nq),
        in_specs=[
            pl.BlockSpec((1, tq, E), lambda b, i: (b, i, 0)),    # xq (query tile)
            pl.BlockSpec((1, Skv, E), lambda b, i: (b, 0, 0)),   # xkv (re-DMA only when b changes)
            w_spec, b_spec,   # Wq, bq
            w_spec, b_spec,   # Wk, bk
            w_spec, b_spec,   # Wv, bv
            w_spec, b_spec,   # Wo, bo
        ],
        out_specs=pl.BlockSpec((1, tq, E), lambda b, i: (b, i, 0)),
        scratch_shapes=[
            pltpu.VMEM((Skv, E), io_dtype),   # K projection cache (filled at q-tile 0)
            pltpu.VMEM((Skv, E), io_dtype),   # V projection cache (filled at q-tile 0)
            pltpu.VMEM((tq, E), io_dtype),    # per-head output staging (lane concat)
        ],
        compiler_params=pltpu.CompilerParams(
            # q-tile axis MUST be "arbitrary": the K/V cache is written at
            # program_id(1) == 0 and reused by later tiles on the same core.
            dimension_semantics=("parallel", "arbitrary"),
            vmem_limit_bytes=min(int(vmem_cap * 3 // 4), 100 << 20),
        ),
        cost_estimate=cost,
    )(xq, xkv, wq, bq, wk, bk, wv, bv, wo, bo)


def init_dual_attention_params(key, embed_dim, bidirectional=True, dtype=jnp.float32):
    """Deterministic synthetic parameters. Weights stored as (in, out), biases as (1, out)."""
    names = ["q1", "k2", "v2", "out1", "out2"]
    if bidirectional:
        names += ["q2", "k1", "v1"]
    params = {}
    for i, name in enumerate(names):
        kw, kb = jax.random.split(jax.random.fold_in(key, i))
        params[f"w_{name}"] = (jax.random.normal(kw, (embed_dim, embed_dim), jnp.float32)
                               * (1.0 / jnp.sqrt(embed_dim))).astype(dtype)
        params[f"b_{name}"] = (jax.random.normal(kb, (1, embed_dim), jnp.float32)
                               * 0.02).astype(dtype)
    return params


def dual_attention_forward(params, x1, x2, *, num_heads, bidirectional=True):
    """Mirrors DualAttention.forward(x1, x2) (no padding masks, eval-mode dropout)."""
    attended_1 = cross_attention(
        x1, x2,
        params["w_q1"], params["b_q1"],
        params["w_k2"], params["b_k2"],
        params["w_v2"], params["b_v2"],
        params["w_out1"], params["b_out1"],
        num_heads=num_heads)
    if bidirectional:
        attended_2 = cross_attention(
            x2, x1,
            params["w_q2"], params["b_q2"],
            params["w_k1"], params["b_k1"],
            params["w_v1"], params["b_v1"],
            params["w_out2"], params["b_out2"],
            num_heads=num_heads)
    else:
        attended_2 = x2
    return attended_1, attended_2


# ----------------------- pure-JAX reference (for verification) -----------------------

def _ref_cross_attention(xq, xkv, wq, bq, wk, bk, wv, bv, wo, bo, num_heads):
    B, Sq, E = xq.shape
    _, Skv, _ = xkv.shape
    Dh = E // num_heads
    scaling = Dh ** -0.5

    def split_heads(x):  # (B, S, E) -> (B, H, S, Dh)
        B_, S_, _ = x.shape
        return x.reshape(B_, S_, num_heads, Dh).transpose(0, 2, 1, 3)

    q = split_heads(xq @ wq + bq)
    k = split_heads(xkv @ wk + bk)
    v = split_heads(xkv @ wv + bv)
    s = jnp.einsum("bhqd,bhkd->bhqk", q, k) * scaling
    p = jax.nn.softmax(s, axis=-1)
    o = jnp.einsum("bhqk,bhkd->bhqd", p, v)
    o = o.transpose(0, 2, 1, 3).reshape(B, Sq, E)
    return o @ wo + bo


def _ref_forward(params, x1, x2, num_heads):
    a1 = _ref_cross_attention(
        x1, x2, params["w_q1"], params["b_q1"], params["w_k2"], params["b_k2"],
        params["w_v2"], params["b_v2"], params["w_out1"], params["b_out1"], num_heads)
    a2 = _ref_cross_attention(
        x2, x1, params["w_q2"], params["b_q2"], params["w_k1"], params["b_k1"],
        params["w_v1"], params["b_v1"], params["w_out2"], params["b_out2"], num_heads)
    return a1, a2


if __name__ == "__main__":
    B, S1, S2, E, H = 2, 8, 16, 32, 4

    key = jax.random.PRNGKey(0)
    k_x1, k_x2, k_p = jax.random.split(key, 3)
    x1 = jax.random.normal(k_x1, (B, S1, E), jnp.float32)
    x2 = jax.random.normal(k_x2, (B, S2, E), jnp.float32)

    params = init_dual_attention_params(k_p, E, bidirectional=True)

    # --- f32 path ---------------------------------------------------------------
    attended_1, attended_2 = dual_attention_forward(
        params, x1, x2, num_heads=H, bidirectional=True)
    jax.block_until_ready((attended_1, attended_2))

    ref_1, ref_2 = _ref_forward(params, x1, x2, H)
    assert attended_1.shape == (B, S1, E) and attended_2.shape == (B, S2, E)
    # approx reciprocal (EUP) introduces ~1e-4 relative error -> slightly relaxed tol
    assert jnp.allclose(attended_1, ref_1, rtol=5e-3, atol=5e-3)
    assert jnp.allclose(attended_2, ref_2, rtol=5e-3, atol=5e-3)

    # --- bf16 path (halves DMA bytes, native bf16 MXU + bf16 exp, f32 accumulation) --
    x1_bf = x1.astype(jnp.bfloat16)
    x2_bf = x2.astype(jnp.bfloat16)
    params_bf = {k: v.astype(jnp.bfloat16) for k, v in params.items()}
    b1, b2 = dual_attention_forward(params_bf, x1_bf, x2_bf, num_heads=H, bidirectional=True)
    jax.block_until_ready((b1, b2))
    assert b1.dtype == jnp.bfloat16 and b2.dtype == jnp.bfloat16

    params_bf32 = {k: v.astype(jnp.float32) for k, v in params_bf.items()}
    rb1, rb2 = _ref_forward(params_bf32, x1_bf.astype(jnp.float32), x2_bf.astype(jnp.float32), H)
    assert jnp.allclose(b1.astype(jnp.float32), rb1, rtol=5e-2, atol=1e-1)
    assert jnp.allclose(b2.astype(jnp.float32), rb2, rtol=5e-2, atol=1e-1)

    # --- multi-q-tile path: exercises the per-batch K/V cache reuse across q tiles ---
    Bm, Sqm, Skvm, Em, Hm = 1, 768, 256, 128, 4
    km = jax.random.split(jax.random.PRNGKey(1), 10)
    xm_q = jax.random.normal(km[0], (Bm, Sqm, Em), jnp.float32)
    xm_kv = jax.random.normal(km[1], (Bm, Skvm, Em), jnp.float32)

    def _w(kk):
        return jax.random.normal(kk, (Em, Em), jnp.float32) * (1.0 / jnp.sqrt(Em))

    def _b(kk):
        return jax.random.normal(kk, (1, Em), jnp.float32) * 0.02

    wqm, bqm = _w(km[2]), _b(km[3])
    wkm, bkm = _w(km[4]), _b(km[5])
    wvm, bvm = _w(km[6]), _b(km[7])
    wom, bom = _w(km[8]), _b(km[9])

    out_m = cross_attention(xm_q, xm_kv, wqm, bqm, wkm, bkm, wvm, bvm, wom, bom,
                            num_heads=Hm)
    jax.block_until_ready(out_m)
    ref_m = _ref_cross_attention(xm_q, xm_kv, wqm, bqm, wkm, bkm, wvm, bvm, wom, bom, Hm)
    # looser tolerance: larger reductions + default XLA matmul precision in the reference
    assert jnp.allclose(out_m, ref_m, rtol=2e-2, atol=2e-2)

    print("KERNEL_OK")
</pallas_src>

<mosaic_0001>
module attributes {stable_mosaic.version = 11 : i64} {
  func.func @_cross_attn_kernel(%arg0: i32, %arg1: i32, %arg2: memref<1x8x32xf32, #tpu.memory_space<vmem>>, %arg3: memref<1x16x32xf32, #tpu.memory_space<vmem>>, %arg4: memref<32x32xf32, #tpu.memory_space<vmem>>, %arg5: memref<1x32xf32, #tpu.memory_space<vmem>>, %arg6: memref<32x32xf32, #tpu.memory_space<vmem>>, %arg7: memref<1x32xf32, #tpu.memory_space<vmem>>, %arg8: memref<32x32xf32, #tpu.memory_space<vmem>>, %arg9: memref<1x32xf32, #tpu.memory_space<vmem>>, %arg10: memref<32x32xf32, #tpu.memory_space<vmem>>, %arg11: memref<1x32xf32, #tpu.memory_space<vmem>>, %arg12: memref<1x8x32xf32, #tpu.memory_space<vmem>>, %arg13: memref<16x32xf32, #tpu.memory_space<vmem>>, %arg14: memref<16x32xf32, #tpu.memory_space<vmem>>, %arg15: memref<8x32xf32, #tpu.memory_space<vmem>>) attributes {dimension_semantics = [#tpu.dimension_semantics<parallel>, #tpu.dimension_semantics<arbitrary>], iteration_bounds = array<i64: 2, 1>, scalar_prefetch = 0 : i64, scratch_operands = 3 : i64, tpu.core_type = #tpu.core_type<tc>, window_params = [{transform_indices = @transform_0, window_bounds = array<i64: 1, 8, 32>}, {transform_indices = @transform_1, window_bounds = array<i64: 1, 16, 32>}, {pipeline_mode = #tpu.pipeline_mode<synchronous>, transform_indices = @transform_2, window_bounds = array<i64: 32, 32>}, {pipeline_mode = #tpu.pipeline_mode<synchronous>, transform_indices = @transform_3, window_bounds = array<i64: 1, 32>}, {pipeline_mode = #tpu.pipeline_mode<synchronous>, transform_indices = @transform_4, window_bounds = array<i64: 32, 32>}, {pipeline_mode = #tpu.pipeline_mode<synchronous>, transform_indices = @transform_5, window_bounds = array<i64: 1, 32>}, {pipeline_mode = #tpu.pipeline_mode<synchronous>, transform_indices = @transform_6, window_bounds = array<i64: 32, 32>}, {pipeline_mode = #tpu.pipeline_mode<synchronous>, transform_indices = @transform_7, window_bounds = array<i64: 1, 32>}, {pipeline_mode = #tpu.pipeline_mode<synchronous>, transform_indices = @transform_8, window_bounds = array<i64: 32, 32>}, {pipeline_mode = #tpu.pipeline_mode<synchronous>, transform_indices = @transform_9, window_bounds = array<i64: 1, 32>}, {transform_indices = @transform_10, window_bounds = array<i64: 1, 8, 32>}]} {
    %c0_i32 = arith.constant 0 : i32
    %0 = arith.cmpi eq, %arg1, %c0_i32 : i32
    %1 = arith.extui %0 : i1 to i32
    %c0_i32_0 = arith.constant 0 : i32
    %2 = arith.cmpi ne, %1, %c0_i32_0 : i32
    scf.if %2 {
      %c0_43 = arith.constant 0 : index
      %c0_44 = arith.constant 0 : index
      %c0_45 = arith.constant 0 : index
      %87 = vector.load %arg3[%c0_43, %c0_44, %c0_45] : memref<1x16x32xf32, #tpu.memory_space<vmem>>, vector<1x16x32xf32>
      %88 = vector.shape_cast %87 : vector<1x16x32xf32> to vector<16x32xf32>
      %c0_46 = arith.constant 0 : index
      %c0_47 = arith.constant 0 : index
      %89 = vector.load %arg6[%c0_46, %c0_47] : memref<32x32xf32, #tpu.memory_space<vmem>>, vector<32x32xf32>
      %cst_48 = arith.constant dense<0.000000e+00> : vector<16x32xf32>
      %90 = tpu.matmul %88, %89, %cst_48 {dimension_numbers = #tpu.dot_dimension_numbers<[1], [0], [0], [1], [0, 0, 1, 1], [], []>} : vector<16x32xf32>, vector<32x32xf32>, vector<16x32xf32> -> vector<16x32xf32>
      %c0_49 = arith.constant 0 : index
      %c0_50 = arith.constant 0 : index
      %91 = vector.load %arg7[%c0_49, %c0_50] : memref<1x32xf32, #tpu.memory_space<vmem>>, vector<1x32xf32>
      %92 = vector.broadcast %91 : vector<1x32xf32> to vector<16x32xf32>
      %93 = arith.addf %90, %92 : vector<16x32xf32>
      %c0_51 = arith.constant 0 : index
      %c0_52 = arith.constant 0 : index
      %94 = vector.load %arg8[%c0_51, %c0_52] : memref<32x32xf32, #tpu.memory_space<vmem>>, vector<32x32xf32>
      %cst_53 = arith.constant dense<0.000000e+00> : vector<16x32xf32>
      %95 = tpu.matmul %88, %94, %cst_53 {dimension_numbers = #tpu.dot_dimension_numbers<[1], [0], [0], [1], [0, 0, 1, 1], [], []>} : vector<16x32xf32>, vector<32x32xf32>, vector<16x32xf32> -> vector<16x32xf32>
      %c0_54 = arith.constant 0 : index
      %c0_55 = arith.constant 0 : index
      %96 = vector.load %arg9[%c0_54, %c0_55] : memref<1x32xf32, #tpu.memory_space<vmem>>, vector<1x32xf32>
      %97 = vector.broadcast %96 : vector<1x32xf32> to vector<16x32xf32>
      %98 = arith.addf %95, %97 : vector<16x32xf32>
      %c0_56 = arith.constant 0 : index
      %c0_57 = arith.constant 0 : index
      %99 = vector.load %arg13[%c0_56, %c0_57] : memref<16x32xf32, #tpu.memory_space<vmem>>, vector<16x32xf32>
      tpu.vector_store %arg13[%c0_56, %c0_57], %93 {strides = array<i32>} : memref<16x32xf32, #tpu.memory_space<vmem>>, vector<16x32xf32>,
      %c0_58 = arith.constant 0 : index
      %c0_59 = arith.constant 0 : index
      %100 = vector.load %arg14[%c0_58, %c0_59] : memref<16x32xf32, #tpu.memory_space<vmem>>, vector<16x32xf32>
      tpu.vector_store %arg14[%c0_58, %c0_59], %98 {strides = array<i32>} : memref<16x32xf32, #tpu.memory_space<vmem>>, vector<16x32xf32>,
    } else {
    }
    %c0 = arith.constant 0 : index
    %c0_1 = arith.constant 0 : index
    %c0_2 = arith.constant 0 : index
    %3 = vector.load %arg2[%c0, %c0_1, %c0_2] : memref<1x8x32xf32, #tpu.memory_space<vmem>>, vector<1x8x32xf32>
    %4 = vector.shape_cast %3 : vector<1x8x32xf32> to vector<8x32xf32>
    %c0_3 = arith.constant 0 : index
    %c0_4 = arith.constant 0 : index
    %5 = vector.load %arg4[%c0_3, %c0_4] : memref<32x32xf32, #tpu.memory_space<vmem>>, vector<32x32xf32>
    %cst = arith.constant dense<0.000000e+00> : vector<8x32xf32>
    %6 = tpu.matmul %4, %5, %cst {dimension_numbers = #tpu.dot_dimension_numbers<[1], [0], [0], [1], [0, 0, 1, 1], [], []>} : vector<8x32xf32>, vector<32x32xf32>, vector<8x32xf32> -> vector<8x32xf32>
    %c0_5 = arith.constant 0 : index
    %c0_6 = arith.constant 0 : index
    %7 = vector.load %arg5[%c0_5, %c0_6] : memref<1x32xf32, #tpu.memory_space<vmem>>, vector<1x32xf32>
    %8 = vector.broadcast %7 : vector<1x32xf32> to vector<8x32xf32>
    %9 = arith.addf %6, %8 : vector<8x32xf32>
    %cst_7 = arith.constant 0.353553385 : f32
    %10 = vector.broadcast %cst_7 : f32 to vector<8x32xf32>
    %11 = arith.mulf %9, %10 : vector<8x32xf32>
    %c0_8 = arith.constant 0 : index
    %c0_9 = arith.constant 0 : index
    %12 = vector.load %arg13[%c0_8, %c0_9] : memref<16x32xf32, #tpu.memory_space<vmem>>, vector<16x32xf32>
    %c0_10 = arith.constant 0 : index
    %c0_11 = arith.constant 0 : index
    %13 = vector.load %arg14[%c0_10, %c0_11] : memref<16x32xf32, #tpu.memory_space<vmem>>, vector<16x32xf32>
    %14 = vector.extract_strided_slice %11 {offsets = [0, 0], sizes = [8, 8], strides = [1, 1]} : vector<8x32xf32> to vector<8x8xf32>
    %15 = vector.extract_strided_slice %12 {offsets = [0, 0], sizes = [16, 8], strides = [1, 1]} : vector<16x32xf32> to vector<16x8xf32>
    %16 = vector.extract_strided_slice %13 {offsets = [0, 0], sizes = [16, 8], strides = [1, 1]} : vector<16x32xf32> to vector<16x8xf32>
    %cst_12 = arith.constant dense<0.000000e+00> : vector<8x16xf32>
    %17 = tpu.matmul %14, %15, %cst_12 {dimension_numbers = #tpu.dot_dimension_numbers<[1], [1], [0], [0], [0, 0, 1, 0], [], []>} : vector<8x8xf32>, vector<16x8xf32>, vector<8x16xf32> -> vector<8x16xf32>
    %cst_13 = arith.constant dense<0xFF800000> : vector<8xf32>
    %18 = vector.multi_reduction <maximumf>, %17, %cst_13 [1] : vector<8x16xf32> to vector<8xf32>
    %19 = vector.shape_cast %18 : vector<8xf32> to vector<8x1xf32>
    %20 = vector.broadcast %19 : vector<8x1xf32> to vector<8x16xf32>
    %21 = arith.subf %17, %20 : vector<8x16xf32>
    %22 = math.exp %21 : vector<8x16xf32>
    %cst_14 = arith.constant dense<0.000000e+00> : vector<8xf32>
    %23 = vector.multi_reduction <add>, %22, %cst_14 [1] : vector<8x16xf32> to vector<8xf32>
    %24 = vector.shape_cast %23 : vector<8xf32> to vector<8x1xf32>
    %cst_15 = arith.constant dense<0.000000e+00> : vector<8x8xf32>
    %25 = tpu.matmul %22, %16, %cst_15 {dimension_numbers = #tpu.dot_dimension_numbers<[1], [0], [0], [1], [0, 0, 1, 1], [], []>} : vector<8x16xf32>, vector<16x8xf32>, vector<8x8xf32> -> vector<8x8xf32>
    %26 = tpu.reciprocal %24 {approx = true} : vector<8x1xf32> -> vector<8x1xf32>
    %27 = vector.broadcast %26 : vector<8x1xf32> to vector<8x8xf32>
    %28 = arith.mulf %25, %27 : vector<8x8xf32>
    %c0_16 = arith.constant 0 : index
    %c0_17 = arith.constant 0 : index
    %29 = vector.load %arg15[%c0_16, %c0_17] : memref<8x32xf32, #tpu.memory_space<vmem>>, vector<8x8xf32>
    tpu.vector_store %arg15[%c0_16, %c0_17], %28 {strides = array<i32>} : memref<8x32xf32, #tpu.memory_space<vmem>>, vector<8x8xf32>,
    %30 = vector.extract_strided_slice %11 {offsets = [0, 8], sizes = [8, 8], strides = [1, 1]} : vector<8x32xf32> to vector<8x8xf32>
    %31 = vector.extract_strided_slice %12 {offsets = [0, 8], sizes = [16, 8], strides = [1, 1]} : vector<16x32xf32> to vector<16x8xf32>
    %32 = vector.extract_strided_slice %13 {offsets = [0, 8], sizes = [16, 8], strides = [1, 1]} : vector<16x32xf32> to vector<16x8xf32>
    %cst_18 = arith.constant dense<0.000000e+00> : vector<8x16xf32>
    %33 = tpu.matmul %30, %31, %cst_18 {dimension_numbers = #tpu.dot_dimension_numbers<[1], [1], [0], [0], [0, 0, 1, 0], [], []>} : vector<8x8xf32>, vector<16x8xf32>, vector<8x16xf32> -> vector<8x16xf32>
    %cst_19 = arith.constant dense<0xFF800000> : vector<8xf32>
    %34 = vector.multi_reduction <maximumf>, %33, %cst_19 [1] : vector<8x16xf32> to vector<8xf32>
    %35 = vector.shape_cast %34 : vector<8xf32> to vector<8x1xf32>
    %36 = vector.broadcast %35 : vector<8x1xf32> to vector<8x16xf32>
    %37 = arith.subf %33, %36 : vector<8x16xf32>
    %38 = math.exp %37 : vector<8x16xf32>
    %cst_20 = arith.constant dense<0.000000e+00> : vector<8xf32>
    %39 = vector.multi_reduction <add>, %38, %cst_20 [1] : vector<8x16xf32> to vector<8xf32>
    %40 = vector.shape_cast %39 : vector<8xf32> to vector<8x1xf32>
    %cst_21 = arith.constant dense<0.000000e+00> : vector<8x8xf32>
    %41 = tpu.matmul %38, %32, %cst_21 {dimension_numbers = #tpu.dot_dimension_numbers<[1], [0], [0], [1], [0, 0, 1, 1], [], []>} : vector<8x16xf32>, vector<16x8xf32>, vector<8x8xf32> -> vector<8x8xf32>
    %42 = tpu.reciprocal %40 {approx = true} : vector<8x1xf32> -> vector<8x1xf32>
    %43 = vector.broadcast %42 : vector<8x1xf32> to vector<8x8xf32>
    %44 = arith.mulf %41, %43 : vector<8x8xf32>
    %c0_22 = arith.constant 0 : index
    %c8 = arith.constant 8 : index
    %45 = vector.load %arg15[%c0_22, %c8] : memref<8x32xf32, #tpu.memory_space<vmem>>, vector<8x8xf32>
    tpu.vector_store %arg15[%c0_22, %c8], %44 {strides = array<i32>} : memref<8x32xf32, #tpu.memory_space<vmem>>, vector<8x8xf32>,
    %46 = vector.extract_strided_slice %11 {offsets = [0, 16], sizes = [8, 8], strides = [1, 1]} : vector<8x32xf32> to vector<8x8xf32>
    %47 = vector.extract_strided_slice %12 {offsets = [0, 16], sizes = [16, 8], strides = [1, 1]} : vector<16x32xf32> to vector<16x8xf32>
    %48 = vector.extract_strided_slice %13 {offsets = [0, 16], sizes = [16, 8], strides = [1, 1]} : vector<16x32xf32> to vector<16x8xf32>
    %cst_23 = arith.constant dense<0.000000e+00> : vector<8x16xf32>
    %49 = tpu.matmul %46, %47, %cst_23 {dimension_numbers = #tpu.dot_dimension_numbers<[1], [1], [0], [0], [0, 0, 1, 0], [], []>} : vector<8x8xf32>, vector<16x8xf32>, vector<8x16xf32> -> vector<8x16xf32>
    %cst_24 = arith.constant dense<0xFF800000> : vector<8xf32>
    %50 = vector.multi_reduction <maximumf>, %49, %cst_24 [1] : vector<8x16xf32> to vector<8xf32>
    %51 = vector.shape_cast %50 : vector<8xf32> to vector<8x1xf32>
    %52 = vector.broadcast %51 : vector<8x1xf32> to vector<8x16xf32>
    %53 = arith.subf %49, %52 : vector<8x16xf32>
    %54 = math.exp %53 : vector<8x16xf32>
    %cst_25 = arith.constant dense<0.000000e+00> : vector<8xf32>
    %55 = vector.multi_reduction <add>, %54, %cst_25 [1] : vector<8x16xf32> to vector<8xf32>
    %56 = vector.shape_cast %55 : vector<8xf32> to vector<8x1xf32>
    %cst_26 = arith.constant dense<0.000000e+00> : vector<8x8xf32>
    %57 = tpu.matmul %54, %48, %cst_26 {dimension_numbers = #tpu.dot_dimension_numbers<[1], [0], [0], [1], [0, 0, 1, 1], [], []>} : vector<8x16xf32>, vector<16x8xf32>, vector<8x8xf32> -> vector<8x8xf32>
    %58 = tpu.reciprocal %56 {approx = true} : vector<8x1xf32> -> vector<8x1xf32>
    %59 = vector.broadcast %58 : vector<8x1xf32> to vector<8x8xf32>
    %60 = arith.mulf %57, %59 : vector<8x8xf32>
    %c0_27 = arith.constant 0 : index
    %c16 = arith.constant 16 : index
    %61 = vector.load %arg15[%c0_27, %c16] : memref<8x32xf32, #tpu.memory_space<vmem>>, vector<8x8xf32>
    tpu.vector_store %arg15[%c0_27, %c16], %60 {strides = array<i32>} : memref<8x32xf32, #tpu.memory_space<vmem>>, vector<8x8xf32>,
    %62 = vector.extract_strided_slice %11 {offsets = [0, 24], sizes = [8, 8], strides = [1, 1]} : vector<8x32xf32> to vector<8x8xf32>
    %63 = vector.extract_strided_slice %12 {offsets = [0, 24], sizes = [16, 8], strides = [1, 1]} : vector<16x32xf32> to vector<16x8xf32>
    %64 = vector.extract_strided_slice %13 {offsets = [0, 24], sizes = [16, 8], strides = [1, 1]} : vector<16x32xf32> to vector<16x8xf32>
    %cst_28 = arith.constant dense<0.000000e+00> : vector<8x16xf32>
    %65 = tpu.matmul %62, %63, %cst_28 {dimension_numbers = #tpu.dot_dimension_numbers<[1], [1], [0], [0], [0, 0, 1, 0], [], []>} : vector<8x8xf32>, vector<16x8xf32>, vector<8x16xf32> -> vector<8x16xf32>
    %cst_29 = arith.constant dense<0xFF800000> : vector<8xf32>
    %66 = vector.multi_reduction <maximumf>, %65, %cst_29 [1] : vector<8x16xf32> to vector<8xf32>
    %67 = vector.shape_cast %66 : vector<8xf32> to vector<8x1xf32>
    %68 = vector.broadcast %67 : vector<8x1xf32> to vector<8x16xf32>
    %69 = arith.subf %65, %68 : vector<8x16xf32>
    %70 = math.exp %69 : vector<8x16xf32>
    %cst_30 = arith.constant dense<0.000000e+00> : vector<8xf32>
    %71 = vector.multi_reduction <add>, %70, %cst_30 [1] : vector<8x16xf32> to vector<8xf32>
    %72 = vector.shape_cast %71 : vector<8xf32> to vector<8x1xf32>
    %cst_31 = arith.constant dense<0.000000e+00> : vector<8x8xf32>
    %73 = tpu.matmul %70, %64, %cst_31 {dimension_numbers = #tpu.dot_dimension_numbers<[1], [0], [0], [1], [0, 0, 1, 1], [], []>} : vector<8x16xf32>, vector<16x8xf32>, vector<8x8xf32> -> vector<8x8xf32>
    %74 = tpu.reciprocal %72 {approx = true} : vector<8x1xf32> -> vector<8x1xf32>
    %75 = vector.broadcast %74 : vector<8x1xf32> to vector<8x8xf32>
    %76 = arith.mulf %73, %75 : vector<8x8xf32>
    %c0_32 = arith.constant 0 : index
    %c24 = arith.constant 24 : index
    %77 = vector.load %arg15[%c0_32, %c24] : memref<8x32xf32, #tpu.memory_space<vmem>>, vector<8x8xf32>
    tpu.vector_store %arg15[%c0_32, %c24], %76 {strides = array<i32>} : memref<8x32xf32, #tpu.memory_space<vmem>>, vector<8x8xf32>,
    %c0_33 = arith.constant 0 : index
    %c0_34 = arith.constant 0 : index
    %78 = vector.load %arg15[%c0_33, %c0_34] : memref<8x32xf32, #tpu.memory_space<vmem>>, vector<8x32xf32>
    %c0_35 = arith.constant 0 : index
    %c0_36 = arith.constant 0 : index
    %79 = vector.load %arg10[%c0_35, %c0_36] : memref<32x32xf32, #tpu.memory_space<vmem>>, vector<32x32xf32>
    %cst_37 = arith.constant dense<0.000000e+00> : vector<8x32xf32>
    %80 = tpu.matmul %78, %79, %cst_37 {dimension_numbers = #tpu.dot_dimension_numbers<[1], [0], [0], [1], [0, 0, 1, 1], [], []>} : vector<8x32xf32>, vector<32x32xf32>, vector<8x32xf32> -> vector<8x32xf32>
    %c0_38 = arith.constant 0 : index
    %c0_39 = arith.constant 0 : index
    %81 = vector.load %arg11[%c0_38, %c0_39] : memref<1x32xf32, #tpu.memory_space<vmem>>, vector<1x32xf32>
    %82 = vector.broadcast %81 : vector<1x32xf32> to vector<8x32xf32>
    %83 = arith.addf %80, %82 : vector<8x32xf32>
    %c0_40 = arith.constant 0 : index
    %c0_41 = arith.constant 0 : index
    %c0_42 = arith.constant 0 : index
    %84 = vector.load %arg12[%c0_40, %c0_41, %c0_42] : memref<1x8x32xf32, #tpu.memory_space<vmem>>, vector<1x8x32xf32>
    %85 = vector.shape_cast %84 : vector<1x8x32xf32> to vector<8x32xf32>
    %86 = vector.shape_cast %83 : vector<8x32xf32> to vector<1x8x32xf32>
    tpu.vector_store %arg12[%c0_40, %c0_41, %c0_42], %86 {strides = array<i32>} : memref<1x8x32xf32, #tpu.memory_space<vmem>>, vector<1x8x32xf32>,
    return
  }
  func.func @transform_0(%arg0: i32, %arg1: i32) -> (i32, i32, i32) {
    %c0_i32 = arith.constant 0 : i32
    %c0_i32_0 = arith.constant 0 : i32
    return %arg0, %arg1, %c0_i32 : i32, i32, i32
  }
  func.func @transform_1(%arg0: i32, %arg1: i32) -> (i32, i32, i32) {
    %c0_i32 = arith.constant 0 : i32
    %c0_i32_0 = arith.constant 0 : i32
    %c0_i32_1 = arith.constant 0 : i32
    return %arg0, %c0_i32, %c0_i32_0 : i32, i32, i32
  }
  func.func @transform_2(%arg0: i32, %arg1: i32) -> (i32, i32) {
    %c0_i32 = arith.constant 0 : i32
    %c0_i32_0 = arith.constant 0 : i32
    %c0_i32_1 = arith.constant 0 : i32
    return %c0_i32, %c0_i32_0 : i32, i32
  }
  func.func @transform_3(%arg0: i32, %arg1: i32) -> (i32, i32) {
    %c0_i32 = arith.constant 0 : i32
    %c0_i32_0 = arith.constant 0 : i32
    %c0_i32_1 = arith.constant 0 : i32
    return %c0_i32, %c0_i32_0 : i32, i32
  }
  func.func @transform_4(%arg0: i32, %arg1: i32) -> (i32, i32) {
    %c0_i32 = arith.constant 0 : i32
    %c0_i32_0 = arith.constant 0 : i32
    %c0_i32_1 = arith.constant 0 : i32
    return %c0_i32, %c0_i32_0 : i32, i32
  }
  func.func @transform_5(%arg0: i32, %arg1: i32) -> (i32, i32) {
    %c0_i32 = arith.constant 0 : i32
    %c0_i32_0 = arith.constant 0 : i32
    %c0_i32_1 = arith.constant 0 : i32
    return %c0_i32, %c0_i32_0 : i32, i32
  }
  func.func @transform_6(%arg0: i32, %arg1: i32) -> (i32, i32) {
    %c0_i32 = arith.constant 0 : i32
    %c0_i32_0 = arith.constant 0 : i32
    %c0_i32_1 = arith.constant 0 : i32
    return %c0_i32, %c0_i32_0 : i32, i32
  }
  func.func @transform_7(%arg0: i32, %arg1: i32) -> (i32, i32) {
    %c0_i32 = arith.constant 0 : i32
    %c0_i32_0 = arith.constant 0 : i32
    %c0_i32_1 = arith.constant 0 : i32
    return %c0_i32, %c0_i32_0 : i32, i32
  }
  func.func @transform_8(%arg0: i32, %arg1: i32) -> (i32, i32) {
    %c0_i32 = arith.constant 0 : i32
    %c0_i32_0 = arith.constant 0 : i32
    %c0_i32_1 = arith.constant 0 : i32
    return %c0_i32, %c0_i32_0 : i32, i32
  }
  func.func @transform_9(%arg0: i32, %arg1: i32) -> (i32, i32) {
    %c0_i32 = arith.constant 0 : i32
    %c0_i32_0 = arith.constant 0 : i32
    %c0_i32_1 = arith.constant 0 : i32
    return %c0_i32, %c0_i32_0 : i32, i32
  }
  func.func @transform_10(%arg0: i32, %arg1: i32) -> (i32, i32, i32) {
    %c0_i32 = arith.constant 0 : i32
    %c0_i32_0 = arith.constant 0 : i32
    return %arg0, %arg1, %c0_i32 : i32, i32, i32
  }
}

</mosaic_0001>

<bundles_post_ra>
// kernel: tpu_custom_call.1
= control target key start
LH: loop header
LB: loop body
LE: loop exit
PB: predicated region body
PF: predicated region fallthrough
CT: control target
= control target key end

     0   :  { %s2947_s0 = inlined_call_operand.hbm [shape: f32[2,8,32], index: 0, kind: input, shape index: {}]   ;;  %s2948_s1 = inlined_call_operand.hbm [shape: f32[2,16,32], index: 1, kind: input, shape index: {}]   ;;  %s2949_s2 = inlined_call_operand.hbm [shape: f32[32,32], index: 2, kind: input, shape index: {}]   ;;  %s2950_s3 = inlined_call_operand.vmem [shape: f32[1,32], index: 3, kind: input, shape index: {}]   ;;  %s2951_s4 = inlined_call_operand.hbm [shape: f32[32,32], index: 4, kind: input, shape index: {}]   ;;  %s2952_s5 = inlined_call_operand.vmem [shape: f32[1,32], index: 5, kind: input, shape index: {}]   ;;  %s2953_s6 = inlined_call_operand.hbm [shape: f32[32,32], index: 6, kind: input, shape index: {}]   ;;  %s2954_s7 = inlined_call_operand.vmem [shape: f32[1,32], index: 7, kind: input, shape index: {}]   ;;  %s2955_s8 = inlined_call_operand.hbm [shape: f32[32,32], index: 8, kind: input, shape index: {}]   ;;  %s2956_s9 = inlined_call_operand.vmem [shape: f32[1,32], index: 9, kind: input, shape index: {}]   ;;  %s2957_s10 = inlined_call_operand.hbm [shape: f32[2,8,32], index: 10, kind: output, shape index: {}]  }
   0x1   :  { %2964 = sst [smem:[#allocation24_spill]] %s2947_s0 }
   0x2   :  { %2965 = sst [smem:[#allocation25_spill]] %s2949_s2 }
   0x3   :  { %2966 = sst [smem:[#allocation26_spill]] %s2951_s4 }
   0x4   :  { %2967 = sst [smem:[#allocation27_spill]] %s2953_s6 }
   0x5   :  { %2968 = sst [smem:[#allocation28_spill]] %s2954_s7 }
   0x6   :  { %2969 = sst [smem:[#allocation29_spill]] %s2956_s9 }
   0x7   :  { %2970 = sst [smem:[#allocation30_spill]] %s2957_s10 }
   0x8   :  { %15 = vsyncpa [#allocation6], 0 }
   0x9   :  { %17 = vsyncpa [#allocation6 + $0x1], 0 }
   0xa   :  { %18 = vsyncpa [#allocation9], 0 }
   0xb   :  { %20 = vsyncpa [#allocation9 + $0x1], 0 }
   0xc   :  { %21 = vsyncpa [#allocation12], 0 }
   0xd   :  { %22 = vsyncpa [#allocation15], 0 }
   0xe   :  { %23 = vsyncpa [#allocation7], 0 }
   0xf   :  { %25 = vsyncpa [#allocation7 + $0x1], 0  ;;  %s2478_s13 = smov 0   ;;  %s2480_s14 = smov 0  }
  0x10   :  { %s2482_s15 = smov 0   ;;  %s2484_s16 = smov 0  }
  0x11   :  { %s2486_s17 = smov 0   ;;  %s2488_s18 = smov 0  }
  0x12 LB: > { %2971 = sst [smem:[#allocation23_spill]] %s2395_s16  ;;  %s2509_s19 = sadd.s32 4294967295, %s2403_s18   ;;  %s2403_s18 = sphi %s2488_s18, %s31_s18   ;;  %s2399_s17 = sphi %s2486_s17, %s3009_s17   ;;  %s2395_s16 = sphi %s2484_s16, %s3008_s16   ;;  %s2391_s15 = sphi %s2482_s15, %s3007_s15   ;;  %s2387_s14 = sphi %s2480_s14, %s3006_s14   ;;  %s2383_s13 = sphi %s2478_s13, %s3005_s13  }
  0x13   : > { %p1716_p0 = scmp.ge.s32.totalorder %s2403_s18, 1  ;;  %p2959_p1 = scmp.eq.s32.totalorder %s2509_s19, 0 }
  0x14   : > { %p298_p2 = scmp.lt.s32.totalorder %s2403_s18, 3  ;;  %s2405_s21 = smov [#allocation10]  }
  0x15   : > { %s310_s22 = sshll.u32 %s2405_s21, 4  ;;  %s2406_s24 = smov [#allocation11]   ;;  %s2518_s22 = int_to_ptr.vmem [resolvable:$true] %s310_s22 }
  0x16   : > { %p2514_p3 = pnand %p1716_p0, %p298_p2  ;;  %s326_s25 = sshll.u32 %s2406_s24, 4  ;;  %s2529_s25 = int_to_ptr.vmem [resolvable:$true] %s326_s25 }
  0x17   : > { %s2407_s26 = smov [#allocation13]   ;;  %s2974_s2 = sld [smem:[#allocation25_spill]] }
  0x18   : > { %s2972_s20 = scalar_select %p2514_p3, 1, 0 }
  0x19   : > { %p1990_p4 = pneg %p2514_p3  ;;  %s2531_s27 = sshll.u32 %s2407_s26, 4  ;;  %s343_s27 = int_to_ptr.vmem [resolvable:$true] %s2531_s27 }
  0x1b   : > { %p2525_p6 = pnand %p1990_p4, %p2959_p1 }
  0x1d   : > { %s2133_s30 = scalar_lea.hbm %s2974_s2, 512  ;;  %p2541_p8 = pneg %p2525_p6 }
  0x1e   : > { %p2134_p7 = scmp.ne.s32.totalorder %s2974_s2, %s2133_s30  ;;  %p2140_p11 = scmp.lt.u32.totalorder %s2133_s30, %s2974_s2 }
  0x20   : > { %p2136_p9 = pnand %p2541_p8, %p2134_p7 }
  0x22   : > { %p2137_p10 = pneg %p2136_p9 }
  0x24   : > { %p2142_p12 = pnand %p2140_p11, %p2137_p10 }
  0x26   : > { %2145 = shalt.err (!%p2142_p12)
}
  0x27   : > { %s2146_s28 = scalar_lea.vmem %s2518_s22, 512  ;;  %p2154_p4 = scmp.lt.s32.totalorder %s2518_s22, %s2518_s22 }
  0x28   : > { %p2147_p13 = scmp.ne.s32.totalorder %s2518_s22, %s2146_s28  ;;  %p2155_p5 = scmp.lt.s32.totalorder %s2146_s28, %s2146_s28 }
  0x2a   : > { %p2149_p0 = pnand %p2147_p13, %p2541_p8  ;;  %p2156_p7 = por %p2155_p5, %p2154_p4 }
  0x2c   : > { %p2150_p2 = pneg %p2149_p0 }
  0x2e   : > { %p2157_p9 = pnand %p2156_p7, %p2150_p2 }
  0x30   : > { %2160 = shalt.err (!%p2157_p9)
}
  0x31   : > { %s2961_s29 = smov 128   ;;  %s2962_s30 = smov 8  }
  0x32   : > { %1993 = dma.hbm_to_vmem [thread:$0]  (!%p2525_p6), %s2974_s2, 512, %s2518_s22, [#allocation9], %s2961_s29, %s2961_s29, %s2962_s30  }
  0x33   : > { %s2976_s4 = sld [smem:[#allocation26_spill]] }
  0x39   : > { %s2161_s28 = scalar_lea.hbm %s2976_s4, 512 }
  0x3a   : > { %p2162_p5 = scmp.ne.s32.totalorder %s2976_s4, %s2161_s28  ;;  %p2168_p12 = scmp.lt.u32.totalorder %s2161_s28, %s2976_s4 }
  0x3c   : > { %p2164_p10 = pnand %p2162_p5, %p2541_p8 }
  0x3e   : > { %p2165_p11 = pneg %p2164_p10 }
  0x40   : > { %p2170_p13 = pnand %p2168_p12, %p2165_p11 }
  0x42   : > { %2173 = shalt.err (!%p2170_p13)
}
  0x43   : > { %s2174_s22 = scalar_lea.vmem %s2529_s25, 512  ;;  %p2182_p7 = scmp.lt.s32.totalorder %s2529_s25, %s2529_s25 }
  0x44   : > { %p2175_p0 = scmp.ne.s32.totalorder %s2529_s25, %s2174_s22  ;;  %p2183_p9 = scmp.lt.s32.totalorder %s2174_s22, %s2174_s22 }
  0x46   : > { %p2177_p2 = pnand %p2175_p0, %p2541_p8  ;;  %p2184_p5 = por %p2183_p9, %p2182_p7 }
  0x48   : > { %p2178_p4 = pneg %p2177_p2 }
  0x4a   : > { %p2185_p10 = pnand %p2184_p5, %p2178_p4 }
  0x4c   : > { %2188 = shalt.err (!%p2185_p10)
}
  0x4d   : > { %1996 = dma.hbm_to_vmem [thread:$0]  (!%p2525_p6), %s2976_s4, 512, %s2529_s25, [#allocation12], %s2961_s29, %s2961_s29, %s2962_s30  }
  0x4e   : > { %s2977_s6 = sld [smem:[#allocation27_spill]] }
  0x54   : > { %s2189_s11 = scalar_lea.hbm %s2977_s6, 512 }
  0x55   : > { %p2190_p11 = scmp.ne.s32.totalorder %s2977_s6, %s2189_s11  ;;  %p2196_p0 = scmp.lt.u32.totalorder %s2189_s11, %s2977_s6 }
  0x57   : > { %p2192_p12 = pnand %p2190_p11, %p2541_p8 }
  0x59   : > { %p2193_p13 = pneg %p2192_p12 }
  0x5b   : > { %p2198_p2 = pnand %p2196_p0, %p2193_p13 }
  0x5d   : > { %2201 = shalt.err (!%p2198_p2)
}
  0x5e   : > { %s2202_s22 = scalar_lea.vmem %s343_s27, 512  ;;  %p2210_p5 = scmp.lt.s32.totalorder %s343_s27, %s343_s27 }
  0x5f   : > { %p2203_p4 = scmp.ne.s32.totalorder %s343_s27, %s2202_s22  ;;  %p2211_p10 = scmp.lt.s32.totalorder %s2202_s22, %s2202_s22 }
  0x61   : > { %p2205_p7 = pnand %p2203_p4, %p2541_p8  ;;  %p2212_p1 = por %p2211_p10, %p2210_p5 }
  0x63   : > { %p2206_p9 = pneg %p2205_p7 }
  0x65   : > { %p2213_p3 = pnand %p2212_p1, %p2206_p9 }
  0x67   : > { %2216 = shalt.err (!%p2213_p3)
}
  0x68   : > { %1999 = dma.hbm_to_vmem [thread:$0]  (!%p2525_p6), %s2977_s6, 512, %s343_s27, [#allocation12], %s2961_s29, %s2961_s29, %s2962_s30  }
  0x69   : > { %s2410_s9 = smov [#allocation14]   ;;  %s2217_s12 = scalar_lea.hbm %s2955_s8, 512 }
  0x6a   : > { %s358_s10 = sshll.u32 %s2410_s9, 4  ;;  %p2218_p1 = scmp.ne.s32.totalorder %s2955_s8, %s2217_s12  ;;  %s359_s10 = int_to_ptr.vmem [resolvable:$true] %s358_s10 }
  0x6b   : > { %p2224_p12 = scmp.lt.u32.totalorder %s2217_s12, %s2955_s8 }
  0x6c   : > { %p2220_p3 = pnand %p2218_p1, %p2541_p8 }
  0x6e   : > { %p2221_p11 = pneg %p2220_p3 }
  0x70   : > { %p2226_p13 = pnand %p2224_p12, %p2221_p11 }
  0x72   : > { %2229 = shalt.err (!%p2226_p13)
}
  0x73   : > { %s2230_s27 = scalar_lea.vmem %s359_s10, 512  ;;  %p2238_p7 = scmp.lt.s32.totalorder %s359_s10, %s359_s10 }
  0x74   : > { %p2231_p0 = scmp.ne.s32.totalorder %s359_s10, %s2230_s27  ;;  %p2239_p9 = scmp.lt.s32.totalorder %s2230_s27, %s2230_s27 }
  0x76   : > { %p2233_p2 = pnand %p2231_p0, %p2541_p8  ;;  %p2240_p5 = por %p2239_p9, %p2238_p7 }
  0x78   : > { %p2234_p4 = pneg %p2233_p2 }
  0x7a   : > { %p2241_p10 = pnand %p2240_p5, %p2234_p4 }
  0x7c   : > { %2244 = shalt.err (!%p2241_p10)
}
  0x7d   : > { %2002 = dma.hbm_to_vmem [thread:$0]  (!%p2525_p6), %s2955_s8, 512, %s359_s10, [#allocation15], %s2961_s29, %s2961_s29, %s2962_s30  }
  0x7e   : > { %s1715_s23 = sadd.s32 4294967294, %s2403_s18   ;;  %s43_s21 = sadd.s32 1, %s2399_s17 }
  0x7f   : > { %p45_p8 = scmp.ge.s32.totalorder %s43_s21, 2  ;;  %s52_s9 = sadd.s32 1, %s2391_s15 }
  0x80   : > { %p59_p1 = scmp.ne.s32.totalorder %s2391_s15, %s2387_s14  ;;  %p60_p3 = scmp.eq.s32.totalorder %s2403_s18, 0 }
  0x81   : > { %s3011_s21 = smov (%p45_p8, %s43_s21), 0  ;;  %p65_p12 = scmp.ne.s32.totalorder %s2387_s14, %s2383_s13 }
  0x82   : > { %p2642_p11 = por %p60_p3, %p59_p1  ;;  %s47_s10 = ssub.s32 %s2399_s17, %s3011_s21 }
  0x83   : > { %p285_p6 = scmp.eq.s32.totalorder %s2509_s19, 1  ;;  %p50_p13 = scmp.eq.s32.totalorder %s47_s10, 0 }
  0x84   : > { %p2979_p0 = scmp.eq.s32.totalorder %s2509_s19, 0  ;;  %p291_p7 = scmp.eq.s32.totalorder %s1715_s23, 1 }
  0x85   : > { %p2657_p4 = por %p285_p6, %p59_p1  ;;  %p2018_p5 = scmp.lt.s32.totalorder %s2403_s18, 2 }
  0x86   : > { %p2653_p2 = por %p2979_p0, %p65_p12  ;;  %p2664_p9 = por %p291_p7, %p65_p12 }
  0x87   : > { %s2981_s12 = scalar_select %p2657_p4, 1, 0 }
  0x88   : > { %s2662_s24 = scalar_select %p50_p13, %s2391_s15, %s52_s9  }
  0x89   : > { %s2982_s26 = scalar_select %p2664_p9, 1, 0 }
  0x8a   : > { %s2670_s28 = sand.u32 1, %s2391_s15   ;;  %s1723_s22 = sshll.u32 %s2399_s17, 7 }
  0x8b   : > { %s1722_s27 = sshll.u32 %s2670_s28, 3  ;;  %s2983_s0 = sld [smem:[#allocation24_spill]] }
  0x8c   : > { %s379_s23 = scalar_lea.vmem [#allocation5], %s1722_s27  ;;  %p2681_p10 = pnand %p2018_p5, %p2642_p11 }
  0x8d   : > { %s387_s9 = sshll.u32 %s379_s23, 4  ;;  %s376_s2 = scalar_lea.sflag [#allocation6], %s2670_s28  ;;  %s2685_s9 = int_to_ptr.vmem [resolvable:$true] %s387_s9 }
  0x8e   : > { %p2247_p1 = pneg %p2681_p10 }
  0x91   : > { %s2677_s10 = scalar_lea.hbm %s2983_s0, %s1723_s22  ;;  %s2250_s27 = scalar_lea.hbm %s2983_s0, 256 }
  0x92   : > { %s2245_s25 = scalar_lea.hbm %s2677_s10, 128  ;;  %p2251_p11 = scmp.lt.u32.totalorder %s2677_s10, %s2983_s0 }
  0x93   : > { %p2246_p8 = scmp.ne.s32.totalorder %s2677_s10, %s2245_s25  ;;  %p2252_p6 = scmp.lt.u32.totalorder %s2250_s27, %s2245_s25 }
  0x94   : > { %p2254_p0 = scmp.lt.u32.totalorder %s2245_s25, %s2677_s10 }
  0x95   : > { %p2248_p3 = pnand %p2247_p1, %p2246_p8  ;;  %p2253_p13 = por %p2252_p6, %p2251_p11 }
  0x97   : > { %p2249_p12 = pneg %p2248_p3  ;;  %p2255_p7 = por %p2254_p0, %p2253_p13 }
  0x99   : > { %p2256_p5 = pnand %p2255_p7, %p2249_p12 }
  0x9b   : > { %2259 = shalt.err (!%p2256_p5)
}
  0x9c   : > { %s2260_s30 = scalar_lea.vmem %s2685_s9, 128  ;;  %s2411_s22 = smov [#allocation5]  }
  0x9d   : > { %p2261_p8 = scmp.ne.s32.totalorder %s2685_s9, %s2260_s30  ;;  %s2265_s16 = sshll.u32 %s2411_s22, 4  ;;  %s2266_s16 = int_to_ptr.vmem [resolvable:$false] %s2265_s16 }
  0x9e   : > { %s2267_s7 = scalar_lea.vmem %s2266_s16, 256  ;;  %p2268_p4 = scmp.lt.s32.totalorder %s2685_s9, %s2266_s16 }
  0x9f   : > { %p2263_p3 = pnand %p2261_p8, %p2247_p1  ;;  %p2269_p11 = scmp.lt.s32.totalorder %s2267_s7, %s2260_s30 }
  0xa1   : > { %p2264_p9 = pneg %p2263_p3  ;;  %p2270_p6 = por %p2269_p11, %p2268_p4 }
  0xa3   : > { %p2271_p13 = pnand %p2270_p6, %p2264_p9 }
  0xa5   : > { %2274 = shalt.err (!%p2271_p13)
}
  0xa6   : > { %2006 = dma.hbm_to_vmem [thread:$0]  (!%p2681_p10), %s2677_s10, 128, %s2685_s9, %s376_s2  }
  0xa7   : > { %s1765_s25 = sshll.u32 %s2399_s17, 8  ;;  %s2985_s27 = sshll.u32 %s2670_s28, 4 }
  0xa8   : > { %s398_s23 = scalar_lea.vmem [#allocation8], %s2985_s27  ;;  %s394_s16 = sand.u32 1, %s2403_s18  }
  0xa9   : > { %s405_s22 = sshll.u32 %s398_s23, 4  ;;  %s2723_s0 = scalar_lea.hbm %s2948_s1, %s1765_s25  ;;  %s2717_s22 = int_to_ptr.vmem [resolvable:$true] %s405_s22 }
  0xaa   : > { %s2725_s4 = scalar_lea.sflag [#allocation9], %s394_s16  ;;  %s2275_s6 = scalar_lea.hbm %s2723_s0, 256 }
  0xab   : > { %p2276_p4 = scmp.ne.s32.totalorder %s2723_s0, %s2275_s6  ;;  %s2280_s10 = scalar_lea.hbm %s2948_s1, 512 }
  0xac   : > { %p2281_p0 = scmp.lt.u32.totalorder %s2723_s0, %s2948_s1  ;;  %p2282_p7 = scmp.lt.u32.totalorder %s2280_s10, %s2275_s6 }
  0xad   : > { %p2278_p9 = pnand %p2276_p4, %p2247_p1  ;;  %p2284_p8 = scmp.lt.u32.totalorder %s2275_s6, %s2723_s0 }
  0xae   : > { %p2283_p5 = por %p2282_p7, %p2281_p0 }
  0xaf   : > { %p2279_p12 = pneg %p2278_p9 }
  0xb0   : > { %p2285_p3 = por %p2284_p8, %p2283_p5 }
  0xb2   : > { %p2286_p11 = pnand %p2285_p3, %p2279_p12 }
  0xb4   : > { %2289 = shalt.err (!%p2286_p11)
}
  0xb5   : > { %s2290_s25 = scalar_lea.vmem %s2717_s22, 256  ;;  %s2412_s23 = smov [#allocation8]  }
  0xb6   : > { %p2291_p6 = scmp.ne.s32.totalorder %s2717_s22, %s2290_s25  ;;  %s2295_s16 = sshll.u32 %s2412_s23, 4  ;;  %s2296_s16 = int_to_ptr.vmem [resolvable:$false] %s2295_s16 }
  0xb7   : > { %s2297_s30 = scalar_lea.vmem %s2296_s16, 512  ;;  %p2298_p9 = scmp.lt.s32.totalorder %s2717_s22, %s2296_s16 }
  0xb8   : > { %p2293_p13 = pnand %p2291_p6, %p2247_p1  ;;  %p2299_p0 = scmp.lt.s32.totalorder %s2297_s30, %s2290_s25 }
  0xba   : > { %p2294_p4 = pneg %p2293_p13  ;;  %p2300_p7 = por %p2299_p0, %p2298_p9 }
  0xbc   : > { %p2301_p5 = pnand %p2300_p7, %p2294_p4 }
  0xbe   : > { %2304 = shalt.err (!%p2301_p5)
}
  0xbf   : > { %s2986_s6 = smov 8   ;;  %s2987_s7 = smov 128  }
  0xc0   : > { %2009 = dma.hbm_to_vmem [thread:$0]  (!%p2681_p10), %s2723_s0, 256, %s2717_s22, %s2725_s4, %s2987_s7, %s2987_s7, %s2986_s6  }
  0xc1   : > { %p2988_p1 = scmp.ne.s32.totalorder %s2972_s20, 0 }
  0xc2   : > { %s2757_s2 = sand.u32 (!%p2988_p1), 1, %s2387_s14  }
  0xc3   : > { %417 = sbr.rel (%p2988_p1) target bundleno = 2529 (0x9e1), region = 60  ;;  %s1728_s28 = sshll.u32 (!%p2988_p1), %s2757_s2, 3 }
  0xc4   : > { %s420_s10 = scalar_lea.sflag (!%p2988_p1), [#allocation6], %s2757_s2  ;;  %s2763_s29 = scalar_lea.vmem (!%p2988_p1), [#allocation5], %s1728_s28 }
  0xca   : > { %2358 = dma.done.wait (%p2653_p2), %s420_s10, 128  }
  0xcb   : > { %2360 = vsyncadd (%p2653_p2), %s420_s10, 4294967168  ;;  %s428_s0 = sand.u32 1, %s2509_s19   ;;  %s1729_s4 = sshll.u32 %s2757_s2, 4 }
  0xcc   : > { %s429_s20 = scalar_lea.sflag [#allocation9], %s428_s0  ;;  %s432_s22 = scalar_lea.vmem [#allocation8], %s1729_s4 }
  0xcd   : > { %2362 = dma.done.wait (%p2653_p2), %s429_s20, 256  }
  0xce   : > { %2364 = vsyncadd (%p2653_p2), %s429_s20, 4294967040  ;;  %p2989_p10 = scmp.eq.s32.totalorder %s2509_s19, 0 }
  0xd0   : > { %2366 = dma.done.wait (%p2989_p10), [#allocation9], 512   ;;  %p2990_p12 = pmov %p2989_p10 }
  0xd1   : > { %p2991_p8 = pmov %p2989_p10 }
  0xd2   : > { %2368 = vsyncadd (%p2990_p12), [#allocation9], 4294966784 }
  0xd3   : > { %2370 = dma.done.wait (%p2991_p8), [#allocation12], 1024   ;;  %p2992_p3 = pmov %p2991_p8 }
  0xd5   : > { %2372 = vsyncadd (%p2992_p3), [#allocation12], 4294966272  ;;  %p2993_p11 = pmov %p2992_p3 }
  0xd6   : > { %p2994_p6 = pmov %p2992_p3 }
  0xd7   : > { %2374 = dma.done.wait (%p2993_p11), [#allocation15], 512  }
  0xd8   : > { %2376 = vsyncadd (%p2994_p6), [#allocation15], 4294966784  ;;  %vm507_vm0 = vcmask 261120   ;;  %v496_v0 = vld [vmem:[#allocation11] sm:$0xff]  ;;  %v497_v1 = vld [vmem:[#allocation11 + $0x8] sm:$0xff]  ;;  %v2413_v11 = vmov 0.0|0.0  }
  0xd9   : > { %v498_v2 = vld [vmem:[#allocation11 + $0x10] sm:$0xff]  ;;  %v1912_v3 = vpack.c.bf16 %v497_v1, %v496_v0  ;;  %v499_v4 = vld [vmem:[#allocation11 + $0x18] sm:$0xff]  ;;  %v680_v7 = vld [vmem:[#allocation10] sm:$0xff]  ;;  %vm2414_vm1 = vmmov 0   ;;  %v2415_v15 = vmov 0.0   ;;  %vm770_vm2 = vcmask 64512  }
  0xda   : > { %v494_v5 = vld [vmem:[%s432_s22] sm:$0xff]  ;;  %v1916_v6 = vpack.c.bf16 %v499_v4, %v498_v2  ;;  %v681_v8 = vld [vmem:[#allocation10 + $0x8] sm:$0xff]  ;;  %v683_v13 = vld [vmem:[#allocation10 + $0x18] sm:$0xff]  ;;  %s2416_s25 = smov 120   ;;  %s2997_s30 = sld [smem:[#allocation28_spill]]  ;;  %vm850_vm4 = vcmask 130048  }
  0xdb   : > { %1820 = vmatprep.mubr.msk.f32.mxu0 %vm507_vm0, %v494_v5  ;;  %1831 = vmatprep.mubr.msk.f32.mxu1 %vm507_vm0, %v494_v5  ;;  %v495_v9 = vld [vmem:[%s432_s22 + $0x8] sm:$0xff]  ;;  %v1929_v10 = vpack.c.bf16 %v681_v8, %v680_v7  ;;  %v682_v12 = vld [vmem:[#allocation10 + $0x10] sm:$0xff]  ;;  %v589_v17 = vld [vmem:[#allocation13] sm:$0xff]  ;;  %s2417_s6 = smov 112   ;;  %s2418_s7 = smov 104   ;;  %vm1114_vm5 = vcmask 130112  }
  0xdc   : > { %1913 = vmatprep.subr.bf16.mxu0 %v1912_v3  ;;  %v1932_v14 = vpack.c.bf16 %v683_v13, %v682_v12  ;;  %v679_v16 = vld [vmem:[%s2763_s29] sm:$0xff]  ;;  %v590_v18 = vld [vmem:[#allocation13 + $0x8] sm:$0xff]  ;;  %vm2813_vm3 = vmpackc.low %vm770_vm2, %vm770_vm2  ;;  %s2419_s10 = smov 16   ;;  %s2420_s29 = smov 8   ;;  %vm1292_vm6 = vcmask 195712   ;;  %vm1470_vm7 = vcmask 261312  }
  0xdd   : > { %1915 = vmatpush3.bf16.msra.mxu0 %v1912_v3  ;;  %v1920_v19 = vpack.c.bf16 %v590_v18, %v589_v17  ;;  %v591_v20 = vld [vmem:[#allocation13 + $0x10] sm:$0xff]  ;;  %v592_v21 = vld [vmem:[#allocation13 + $0x18] sm:$0xff]  ;;  %v1735_v23 = vld [vmem:[%s2952_s5] ss:$0 sm:$0xff]  ;;  %s2998_s0 = sld [smem:[#allocation23_spill]]  ;;  %s2421_s4 = smov 24  }
  0xde   : > { %1917 = vmatprep.subr.bf16.mxu0 %v1916_v6  ;;  %v1924_v22 = vpack.c.bf16 %v592_v21, %v591_v20  ;;  %v1741_v28 = vld [vmem:[%s2950_s3] ss:$0 sm:$0xff]  ;;  %s2999_s19 = sld [smem:[#allocation29_spill]]  ;;  %s489_s9 = scalar_lea.vmem [#allocation16], %s1728_s28 }
  0xdf   : > { %1921 = vmatprep.subr.bf16.mxu1 %v1920_v19  ;;  %s1573_s27 = sshll.u32 %s489_s9, 4  ;;  %s3000_s16 = sld [smem:[#allocation30_spill]]  ;;  %s2899_s27 = int_to_ptr.vmem [resolvable:$true] %s1573_s27 }
  0xe0   : > { %1923 = vmatpush3.bf16.msra.mxu1 %v1920_v19  ;;  %v1738_v38 = vld [vmem:[%s2997_s30] ss:$0 sm:$0xff]  ;;  %p3002_p13 = scmp.ne.s32.totalorder %s2981_s12, 0  ;;  %s2422_s28 = smov [#allocation16]  }
  0xe1   : > { %1919 = vmatpush3.bf16.msra.mxu0 %v1916_v6  ;;  %1925 = vmatprep.subr.bf16.mxu1 %v1924_v22 }
  0xe2   : > { %1928 = vmatprep.subr.bf16.mxu0 %v2413_v11 }
  0xe3   : > { %s1762_s11 = sshll.u32 %s2998_s0, 7 }
  0xe4   : > { %1821 = vmatmul.mubr.msk.f32.vlgmr.msra.gmra.mrb[0].mxu0 %vm507_vm0, %v495_v9  ;;  %1927 = vmatpush3.bf16.msra.mxu1 %v1924_v22 }
  0xe5   : > { %1930 = vmatpush3.bf16.msra.mxu0 %v1929_v10  ;;  %1842 = vmatprep.mubr.msk.f32.mxu0 %vm2414_vm1, %v2415_v15  ;;  %s3001_s30 = smov %s3000_s16 }
  0xe6   : > { %1931 = vmatprep.subr.bf16.mxu0 %v2413_v11  ;;  %1934 = vmatprep.subr.bf16.mxu1 %v2413_v11 }
  0xe7   : > { %1832 = vmatmul.mubr.msk.f32.vlgmr.msra.gmra.mrb[0].mxu1 %vm507_vm0, %v495_v9 }
  0xe8   : > { %1849 = vmatprep.mubr.msk.f32.mxu1 %vm2414_vm1, %v2415_v15 }
  0xe9   : > { %1933 = vmatpush3.bf16.msra.mxu0 %v1932_v14 }
  0xea   : > { %1945 = vmatprep.subr.bf16.mxu0 %v2413_v11 }
  0xec   : > { %1843 = vmatmul.mubr.msk.f32.vlgmr.msra.gmra.mrb[2].mxu0 %vm507_vm0, %v679_v16 }
  0xed   : > { %1870 = vmatprep.mubr.msk.f32.mxu0 %vm2414_vm1, %v2415_v15 }
 0x1b7   : > { %v1822_v24 = vpop.f32.mrb[0].mxu0 }
 0x1b8   : > { %v586_v25 = vadd.f32 %v1822_v24, %v1735_v23  ;;  %v580_v26 = vpop.f32.mrb[1].mxu0 }
 0x1b9   : > { %v581_v27 = vadd.f32 %v1735_v23, %v580_v26 }
 0x1ba   : > { %676 = vst.msk [vmem:[#allocation2 + $0x8] sm:$0xff] %vm507_vm0, %v586_v25  ;;  %v1833_v39 = vpop.f32.mrb[0].mxu1 }
 0x1bb   : > { %675 = vst.msk [vmem:[#allocation2] sm:$0xff] %vm507_vm0, %v581_v27  ;;  %v672_v40 = vadd.f32 %v1833_v39, %v1738_v38  ;;  %v666_v41 = vpop.f32.mrb[1].mxu1 }
 0x1bc   : > { %v667_v42 = vadd.f32 %v1738_v38, %v666_v41 }
 0x1bd   : > { %678 = vst.msk [vmem:[#allocation3 + $0x8] sm:$0xff] %vm507_vm0, %v672_v40 }
 0x1be   : > { %677 = vst.msk [vmem:[#allocation3] sm:$0xff] %vm507_vm0, %v667_v42 }
 0x1bf   : > { %v761_v29 = vpop.f32.mrb[2].mxu0 }
 0x1c0   : > { %v762_v30 = vadd.f32 %v1741_v28, %v761_v29  ;;  %v1844_v31 = vpop.f32.mrb[3].mxu0 }
 0x1c1   : > { %v767_v32 = vld [vmem:[#allocation2 + $0x8] sm:$0xff] }
 0x1c2   : > { %v766_v33 = vld [vmem:[#allocation2] sm:$0xff]  ;;  %v765_v35 = vmul.f32 0.35355338, %v762_v30 }
 0x1c3   : > { %v1935_v36 = vpack.c.bf16 %v767_v32, %v766_v33  ;;  %v2087_v37 = vpack.i.bf16 %v767_v32, %v766_v33 }
 0x1c4   : > { %936 = vrot.lane.b32.xlu1 %v765_v35, %s2416_s25  ;;  %v769_v44 = vld [vmem:[#allocation3 + $0x8] sm:$0xff] }
 0x1c5   : > { %1937 = vmatpush3.bf16.xpose.msk.msra.mxu1 %vm2813_vm3, %v1935_v36  ;;  %v768_v43 = vld [vmem:[#allocation3] sm:$0xff] }
 0x1c6   : > { %1938 = vmatprep.subr.bf16.mxu1 %v2413_v11  ;;  %v1939_v45 = vpack.c.bf16 %v769_v44, %v768_v43  ;;  %v2828_v46 = vpack.i.bf16 %v769_v44, %v768_v43 }
 0x1cc   : > { %1850 = vmatmul.mubr.msk.f32.vlgmr.msra.gmra.mrb[2].mxu1 %vm770_vm2, %v765_v35 }
 0x1cd   : > { %1856 = vmatprep.mubr.msk.f32.mxu1 %vm2414_vm1, %v2415_v15  ;;  %1940 = vmatpush3.bf16.msra.mxu1 %v1939_v45 }
 0x1ce   : > { %1941 = vmatprep.subr.bf16.mxu1 %v2413_v11 }
 0x236   : > { %v937_v62 = vpop.permute.xlu1 %936 }
 0x29f   : > { %v846_v47 = vpop.f32.mrb[2].mxu1 }
 0x2a0   : > { %v1851_v48 = vpop.f32.mrb[3].mxu1  ;;  %v851_v49 = vsel %vm850_vm4, %v846_v47, -inf }
 0x2a1   : > { %852 = vmax.xlane.f32.xlu0 %v851_v49 }
 0x2b7   : > { %2088 = vrot.lane.b32.xlu0 %v2087_v37, %s2416_s25 }
 0x2bb   : > { %2093 = vrot.lane.b32.xlu0 %v2828_v46, %s2416_s25 }
 0x2bf   : > { %2098 = vrot.lane.b32.xlu0 %v2087_v37, %s2417_s6 }
 0x2c3   : > { %1116 = vrot.lane.b32.xlu0 %v765_v35, %s2417_s6 }
 0x32e   : > { %v853_v50 = vpop.xlane.xlu0 %852 }
 0x32f   : > { %v854_v51 = vsub.f32 %v846_v47, %v853_v50 }
 0x331   : > { %v855_v52 = vmul.f32 1.442695, %v854_v51 }
 0x332   : > { %v2089_v53 = vpop.permute.xlu0 %2088 }
 0x333   : > { %2117 = vpow2.f32 %v855_v52  ;;  %v2091_v57 = vunpack.i.h.bf16 %v2089_v53  ;;  %v2090_v58 = vunpack.i.l.bf16 %v2089_v53 }
 0x335   : > { %v1942_v61 = vpack.c.bf16 %v2091_v57, %v2090_v58 }
 0x336   : > { %v2094_v54 = vpop.permute.xlu0 %2093 }
 0x337   : > { %v2096_v55 = vunpack.i.h.bf16 %v2094_v54  ;;  %v2095_v56 = vunpack.i.l.bf16 %v2094_v54 }
 0x339   : > { %v1946_v59 = vpack.c.bf16 %v2096_v55, %v2095_v56 }
 0x33a   : > { %v2099_v12 = vpop.permute.xlu0 %2098 }
 0x33b   : > { %1947 = vmatpush3.bf16.msra.mxu0 %v1946_v59  ;;  %v2101_v13 = vunpack.i.h.bf16 %v2099_v12  ;;  %v2100_v14 = vunpack.i.l.bf16 %v2099_v12 }
 0x33c   : > { %1948 = vmatprep.subr.bf16.mxu0 %v2413_v11 }
 0x33d   : > { %v2836_v60 = vpop.eup %2117  ;;  %v1949_v17 = vpack.c.bf16 %v2101_v13, %v2100_v14 }
 0x33e   : > { %1857 = vmatmul.mubr.msk.f32.vlgmr.msra.gmra.mrb[4].mxu1 %vm850_vm4, %v2836_v60  ;;  %v1117_v18 = vpop.permute.xlu0 %1116  ;;  %v857_v53 = vsel %vm850_vm4, %v2836_v60, 0.0  ;;  %v1473_v60 = vld [vmem:[#allocation14] sm:$0xff] }
 0x33f   : > { %1944 = vmatpush3.bf16.xpose.msk.msra.mxu1 %vm2813_vm3, %v1942_v61  ;;  %1863 = vmatprep.mubr.msk.f32.mxu1 %vm2414_vm1, %v2415_v15 }
 0x340   : > { %1952 = vmatprep.subr.bf16.mxu1 %v2413_v11 }
 0x346   : > { %1864 = vmatmul.mubr.msk.f32.vlgmr.msra.gmra.mrb[6].mxu1 %vm770_vm2, %v937_v62  ;;  %v1474_v62 = vld [vmem:[#allocation14 + $0x8] sm:$0xff] }
 0x347   : > { %1884 = vmatprep.mubr.msk.f32.mxu1 %vm2414_vm1, %v2415_v15 }
 0x411   : > { %v2848_v63 = vpop.f32.mrb[4].mxu1 }
 0x412   : > { %v1858_v0 = vpop.f32.mrb[5].mxu1 }
 0x413   : > { %v1963_v0 = vpack.c.bf16 %v1474_v62, %v1473_v60 }
 0x419   : > { %v1014_v1 = vpop.f32.mrb[6].mxu1 }
 0x41a   : > { %v1865_v2 = vpop.f32.mrb[7].mxu1  ;;  %v1018_v3 = vsel %vm850_vm4, %v1014_v1, -inf }
 0x41b   : > { %1019 = vmax.xlane.f32.xlu1 %v1018_v3  ;;  %v1476_v2 = vld [vmem:[#allocation14 + $0x18] sm:$0xff] }
 0x42c   : > { %2103 = vrot.lane.b32.xlu1 %v2828_v46, %s2417_s6  ;;  %s2897_s6 = scalar_lea.hbm %s3000_s16, %s1762_s11 }
 0x430   : > { %2108 = vrot.lane.b32.xlu1 %v2087_v37, %s2418_s7 }
 0x434   : > { %1294 = vrot.lane.b32.xlu1 %v765_v35, %s2418_s7 }
 0x4a8   : > { %v1020_v4 = vpop.xlane.xlu1 %1019 }
 0x4a9   : > { %v1021_v5 = vsub.f32 %v1014_v1, %v1020_v4  ;;  %v1475_v1 = vld [vmem:[#allocation14 + $0x10] sm:$0xff] }
 0x4aa   : > { %v1966_v3 = vpack.c.bf16 %v1476_v2, %v1475_v1 }
 0x4ab   : > { %v1022_v6 = vmul.f32 1.442695, %v1021_v5 }
 0x4ac   : > { %v2104_v7 = vpop.permute.xlu1 %2103 }
 0x4ad   : > { %2119 = vpow2.f32 %v1022_v6  ;;  %v2106_v8 = vunpack.i.h.bf16 %v2104_v7  ;;  %v2105_v9 = vunpack.i.l.bf16 %v2104_v7 }
 0x4af   : > { %v1953_v10 = vpack.c.bf16 %v2106_v8, %v2105_v9  ;;  %v1759_v9 = vld [vmem:[%s2999_s19] ss:$0 sm:$0xff] }
 0x4b0   : > { %v2109_v32 = vpop.permute.xlu1 %2108 }
 0x4b1   : > { %1954 = vmatpush3.bf16.msra.mxu1 %v1953_v10  ;;  %v2111_v33 = vunpack.i.h.bf16 %v2109_v32  ;;  %v2110_v35 = vunpack.i.l.bf16 %v2109_v32 }
 0x4b2   : > { %1955 = vmatprep.subr.bf16.mxu1 %v2413_v11 }
 0x4b3   : > { %v1956_v37 = vpack.c.bf16 %v2111_v33, %v2110_v35 }
 0x4b4   : > { %v1295_v38 = vpop.permute.xlu1 %1294 }
 0x4b7   : > { %v2120_v16 = vpop.eup %2119 }
 0x4b8   : > { %1871 = vmatmul.mubr.msk.f32.vlgmr.msra.gmra.mrb[4].mxu0 %vm850_vm4, %v2120_v16  ;;  %v1024_v24 = vsel %vm850_vm4, %v2120_v16, 0.0 }
 0x4b9   : > { %1951 = vmatpush3.bf16.xpose.msk.msra.mxu0 %vm2813_vm3, %v1949_v17  ;;  %1877 = vmatprep.mubr.msk.f32.mxu0 %vm2414_vm1, %v2415_v15 }
 0x4ba   : > { %1959 = vmatprep.subr.bf16.mxu0 %v2413_v11 }
 0x4c0   : > { %1878 = vmatmul.mubr.msk.f32.vlgmr.msra.gmra.mrb[6].mxu0 %vm770_vm2, %v1117_v18 }
 0x4c1   : > { %1898 = vmatprep.mubr.msk.f32.mxu0 %vm2414_vm1, %v2415_v15 }
 0x58b   : > { %v1104_v19 = vpop.f32.mrb[4].mxu0 }
 0x58c   : > { %v1872_v20 = vpop.f32.mrb[5].mxu0 }
 0x593   : > { %v1194_v21 = vpop.f32.mrb[6].mxu0 }
 0x594   : > { %v1879_v22 = vpop.f32.mrb[7].mxu0  ;;  %v1198_v23 = vsel %vm850_vm4, %v1194_v21, -inf }
 0x595   : > { %1199 = vmax.xlane.f32.xlu0 %v1198_v23 }
 0x5ab   : > { %2113 = vrot.lane.b32.xlu0 %v2828_v46, %s2418_s7  ;;  %s1559_s7 = scalar_lea.sflag [#allocation7], %s2757_s2 }
 0x5ca   : > { %1025 = vadd.xlane.f32.xlu0 %v1024_v24 }
 0x622   : > { %v1200_v25 = vpop.xlane.xlu0 %1199 }
 0x623   : > { %v1201_v26 = vsub.f32 %v1194_v21, %v1200_v25 }
 0x625   : > { %v1202_v27 = vmul.f32 1.442695, %v1201_v26 }
 0x626   : > { %v2114_v28 = vpop.permute.xlu0 %2113 }
 0x627   : > { %2121 = vpow2.f32 %v1202_v27  ;;  %v2116_v29 = vunpack.i.h.bf16 %v2114_v28  ;;  %v2115_v30 = vunpack.i.l.bf16 %v2114_v28 }
 0x629   : > { %v1960_v31 = vpack.c.bf16 %v2116_v29, %v2115_v30 }
 0x62b   : > { %1961 = vmatpush3.bf16.msra.mxu0 %v1960_v31 }
 0x62c   : > { %1962 = vmatprep.subr.bf16.mxu0 %v2413_v11 }
 0x631   : > { %v2122_v36 = vpop.eup %2121 }
 0x632   : > { %1885 = vmatmul.mubr.msk.f32.vlgmr.msra.gmra.mrb[8].mxu1 %vm850_vm4, %v2122_v36  ;;  %v1204_v44 = vsel %vm850_vm4, %v2122_v36, 0.0 }
 0x633   : > { %1958 = vmatpush3.bf16.xpose.msk.msra.mxu1 %vm2813_vm3, %v1956_v37  ;;  %1891 = vmatprep.mubr.msk.f32.mxu1 %vm2414_vm1, %v2415_v15 }
 0x63a   : > { %1892 = vmatmul.mubr.msk.f32.vlgmr.msra.gmra.mrb[10].mxu1 %vm770_vm2, %v1295_v38 }
 0x657   : > { %v1026_v52 = vpop.xlane.xlu0 %1025 }
 0x705   : > { %v1282_v39 = vpop.f32.mrb[8].mxu1 }
 0x706   : > { %v1886_v40 = vpop.f32.mrb[9].mxu1 }
 0x70d   : > { %v1372_v41 = vpop.f32.mrb[10].mxu1 }
 0x70e   : > { %v1893_v42 = vpop.f32.mrb[11].mxu1  ;;  %v1376_v43 = vsel %vm850_vm4, %v1372_v41, -inf }
 0x70f   : > { %1377 = vmax.xlane.f32.xlu1 %v1376_v43 }
 0x713   : > { %1205 = vadd.xlane.f32.xlu1 %v1204_v44 }
 0x79c   : > { %v1378_v45 = vpop.xlane.xlu1 %1377 }
 0x79d   : > { %v1379_v46 = vsub.f32 %v1372_v41, %v1378_v45 }
 0x79f   : > { %v1380_v34 = vmul.f32 1.442695, %v1379_v46 }
 0x7a0   : > { %v1206_v47 = vpop.xlane.xlu1 %1205 }
 0x7a1   : > { %2123 = vpow2.f32 %v1380_v34 }
 0x7a2   : > { %2125 = vrcp.f32 %v1206_v47 }
 0x7a3   : > { %2127 = vrcp.f32 %v1026_v52 }
 0x7ab   : > { %v2124_v48 = vpop.eup %2123 }
 0x7ac   : > { %v2126_v49 = vpop.eup %2125  ;;  %1899 = vmatmul.mubr.msk.f32.vlgmr.msra.gmra.mrb[8].mxu0 %vm850_vm4, %v2124_v48  ;;  %v1382_v50 = vsel %vm850_vm4, %v2124_v48, 0.0 }
 0x7ad   : > { %1383 = vadd.xlane.f32.xlu1 %v1382_v50  ;;  %v1287_v51 = vmul.f32 %v2126_v49, %v1282_v39  ;;  %1909 = vmatprep.mubr.msk.f32.mxu0 %vm2414_vm1, %v2415_v15  ;;  %v2128_v54 = vpop.eup %2127 }
 0x7ae   : > { %v1109_v55 = vmul.f32 %v2128_v54, %v1104_v19  ;;  %1964 = vmatpush3.bf16.msra.mxu0 %v1963_v0 }
 0x7af   : > { %1289 = vrot.lane.b32.xlu0 %v1287_v51, %s2419_s10  ;;  %1965 = vmatprep.subr.bf16.mxu0 %v2413_v11  ;;  %s2305_s10 = scalar_lea.vmem %s2899_s27, 128 }
 0x7b0   : > { %p2306_p2 = scmp.ne.s32.totalorder %s2899_s27, %s2305_s10 }
 0x7b1   : > { %858 = vadd.xlane.f32.xlu1 %v857_v53 }
 0x7b2   : > { %1967 = vmatpush3.bf16.msra.mxu0 %v1966_v3  ;;  %p2307_p4 = pnand %p2306_p2, %p3002_p13 }
 0x7b4   : > { %p2308_p9 = pneg %p2307_p4 }
 0x7c2   : > { %1111 = vrot.lane.b32.xlu1 %v1109_v55, %s2420_s29  ;;  %s2309_s29 = sshll.u32 %s2422_s28, 4  ;;  %s2310_s29 = int_to_ptr.vmem [resolvable:$false] %s2309_s29 }
 0x7c3   : > { %s2311_s0 = scalar_lea.vmem %s2310_s29, 256  ;;  %p2312_p0 = scmp.lt.s32.totalorder %s2899_s27, %s2310_s29 }
 0x7c4   : > { %p2313_p7 = scmp.lt.s32.totalorder %s2311_s0, %s2305_s10 }
 0x7c6   : > { %p2314_p5 = por %p2313_p7, %p2312_p0 }
 0x7c8   : > { %p2315_p1 = pnand %p2314_p5, %p2308_p9 }
 0x821   : > { %v1290_v61 = vpop.permute.xlu0 %1289 }
 0x83a   : > { %v1384_v56 = vpop.xlane.xlu1 %1383 }
 0x83e   : > { %v859_v57 = vpop.xlane.xlu1 %858 }
 0x83f   : > { %2129 = vrcp.f32 %v859_v57 }
 0x840   : > { %2131 = vrcp.f32 %v1384_v56 }
 0x842   : > { %v1112_v15 = vpop.permute.xlu1 %1111 }
 0x849   : > { %v2130_v58 = vpop.eup %2129 }
 0x84a   : > { %v934_v59 = vmul.f32 %v2130_v58, %v2848_v63  ;;  %v2132_v63 = vpop.eup %2131 }
 0x84c   : > { %935 = vst.msk [vmem:[#allocation4] sm:$0xff] %vm770_vm2, %v934_v59 }
 0x84d   : > { %1115 = vst.msk [vmem:[#allocation4] sm:$0xff] %vm1114_vm5, %v1112_v15 }
 0x84e   : > { %1293 = vst.msk [vmem:[#allocation4] sm:$0xff] %vm1292_vm6, %v1290_v61 }
 0x87f   : > { %v1460_v4 = vpop.f32.mrb[8].mxu0 }
 0x880   : > { %v1465_v5 = vmul.f32 %v2132_v63, %v1460_v4  ;;  %v1900_v6 = vpop.f32.mrb[9].mxu0 }
 0x882   : > { %1467 = vrot.lane.b32.xlu1 %v1465_v5, %s2421_s4 }
 0x8f4   : > { %v1468_v7 = vpop.permute.xlu1 %1467 }
 0x8f5   : > { %1471 = vst.msk [vmem:[#allocation4] sm:$0xff] %vm1470_vm7, %v1468_v7 }
 0x8fc   : > { %v1472_v8 = vld [vmem:[#allocation4] sm:$0xff] }
 0x8fd   : > { %1910 = vmatmul.mubr.msk.f32.vlgmr.msra.gmra.mrb[10].mxu0 %vm507_vm0, %v1472_v8 }
 0x9d0   : > { %v1553_v11 = vpop.f32.mrb[10].mxu0 }
 0x9d1   : > { %v1554_v10 = vadd.f32 %v1759_v9, %v1553_v11  ;;  %v1911_v12 = vpop.f32.mrb[11].mxu0 }
 0x9d3   : > { %1557 = vst.msk [vmem:[%s489_s9] sm:$0xff] %vm507_vm0, %v1554_v10 }
 0x9d4   : > { %2318 = shalt.err (!%p2315_p1)
}
 0x9d5   : > { %s2319_s2 = scalar_lea.hbm %s2897_s6, 128  ;;  %s2323_s22 = scalar_lea.hbm %s3001_s30, 256 }
 0x9d6   : > { %p2320_p10 = scmp.ne.s32.totalorder %s2897_s6, %s2319_s2  ;;  %p2324_p3 = scmp.lt.u32.totalorder %s2897_s6, %s3001_s30 }
 0x9d7   : > { %p2325_p11 = scmp.lt.u32.totalorder %s2323_s22, %s2319_s2  ;;  %p2327_p2 = scmp.lt.u32.totalorder %s2319_s2, %s2897_s6 }
 0x9d8   : > { %p2321_p12 = pnand %p2320_p10, %p3002_p13 }
 0x9d9   : > { %p2326_p6 = por %p2325_p11, %p2324_p3 }
 0x9da   : > { %p2322_p8 = pneg %p2321_p12 }
 0x9db   : > { %p2328_p4 = por %p2327_p2, %p2326_p6 }
 0x9dd   : > { %p2329_p9 = pnand %p2328_p4, %p2322_p8 }
 0x9df   : > { %2332 = shalt.err (!%p2329_p9)
}
 0x9e0   : > { %1988 = dma.vmem_to_hbm [thread:$0]  (%p3002_p13), %s2899_s27, 128, %s2897_s6, %s1559_s7  }
 0x9e1 PF: > { %s1585_s9 = sand.u32 1, %s2383_s13   ;;  %p3003_p0 = scmp.ne.s32.totalorder %s2982_s26, 0 }
 0x9e2   : > { %p3004_p7 = scmp.ge.s32.totalorder %s2403_s18, 2  ;;  %s1586_s25 = scalar_lea.sflag [#allocation7], %s1585_s9 }
 0x9e4   : > { %p2011_p5 = pnand %p3004_p7, %p3003_p0 }
 0x9e6   : > { %2378 = dma.done.wait (!%p2011_p5), %s1586_s25, 128  }
 0x9e7   : > { %2380 = vsyncadd (!%p2011_p5), %s1586_s25, 4294967168  ;;  %s31_s18 = sadd.s32 1, %s2403_s18   ;;  %s3005_s13 = smov %s2387_s14 }
 0x9e8   : > { %p28_p1 = scmp.ge.s32.totalorder %s31_s18, 4   ;;  %s3006_s14 = smov %s2391_s15 }
 0x9e9   : > { %s3007_s15 = smov %s2662_s24  ;;  %s3008_s16 = smov %s2399_s17 }
 0x9ea   : > { %s3009_s17 = smov %s3011_s21  ;;  %30 = sbr.rel (!%p28_p1) target bundleno = 18 (0x12), region = 138 }
 0x9f1   :  { %1591 = vsyncpa [#allocation6], 1 }
 0x9f2   :  { %1593 = vsyncpa [#allocation6 + $0x1], 1 }
 0x9f3   :  { %1594 = vsyncpa [#allocation9], 1 }
 0x9f4   :  { %1596 = vsyncpa [#allocation9 + $0x1], 1 }
 0x9f5   :  { %1597 = vsyncpa [#allocation12], 1 }
 0x9f6   :  { %1598 = vsyncpa [#allocation15], 1 }
 0x9f7   :  { %1599 = vsyncpa [#allocation7], 1 }
 0x9f8   :  { %1601 = vsyncpa [#allocation7 + $0x1], 1 }

</bundles_post_ra>
